<compile_context>
chip_gen: v6e
topology: v6e:2x2x1
jax: 0.10.0
libtpu: 0.0.40
codegen_flags: <defaults>
</compile_context>

<pallas_src>
import math

import jax
import jax.numpy as jnp
from jax import lax
from jax.experimental import pallas as pl
from jax.experimental.pallas import tpu as pltpu


_BLOCK_BUDGET_BYTES = 4 * 1024 * 1024   # per input buffer (x2 for double buffering)
_TM_CAP = 1024                          # rows per tile cap
_VMEM_LIMIT_BYTES = 32 * 1024 * 1024    # safe on v5e/v6e (128 MiB) and v7x (64 MiB)


def _min_value(dtype):
    dtype = jnp.dtype(dtype)
    if dtype == jnp.bool_:
        return False
    if jnp.issubdtype(dtype, jnp.floating):
        return -jnp.inf
    return jnp.iinfo(dtype).min


def _round_up(x, m):
    return ((x + m - 1) // m) * m


def _make_kernel(TM, TL, L_eff, G, L_inner, needs_mask, fill):
    """Kernel over grid (row_tiles, lane_tiles). Output block is resident across
    the lane (reduction) axis and holds the running max."""

    def kernel(x_ref, o_ref):
        k = pl.program_id(1)
        blk = x_ref[...]                                    # (TM, TL)

        if needs_mask:  # only when L_eff is split and not a multiple of TL
            lane = lax.broadcasted_iota(jnp.int32, blk.shape, 1)
            valid = (k * TL + lane) < L_eff
            blk = jnp.where(valid, blk, jnp.asarray(fill, dtype=blk.dtype))

        if G > 1:
            # Lane-packed case: TL == L_eff == G * L_inner (single k step).
            m = jnp.max(blk.reshape(TM, G, L_inner), axis=-1)       # (TM, G)
        else:
            m = jnp.max(blk, axis=-1, keepdims=True)                # (TM, 1)

        @pl.when(k == 0)
        def _():
            o_ref[...] = m

        @pl.when(k > 0)
        def _():
            o_ref[...] = jnp.maximum(o_ref[...], m)

    return kernel


def global_max_pooling(x, dim: int = -1):
    """Pallas TPU equivalent of torch `x.max(dim=dim)[0]` (values only)."""
    x = jnp.asarray(x)
    # Move the reduction axis last (identity / elided by XLA when dim is already last).
    x = jnp.moveaxis(x, dim, -1)
    lead_shape = x.shape[:-1]
    L = x.shape[-1]
    rows = math.prod(lead_shape) if lead_shape else 1
    x2 = x.reshape(rows, L)

    itemsize = jnp.dtype(x2.dtype).itemsize
    sub = max(8, 32 // itemsize)            # sublane multiple: 8 f32 / 16 bf16 / 32 int8

    # Lane packing: when L < 128, pack G consecutive rows into one lane-row so the
    # full 128-lane vreg width carries data (the reshape below is contiguous: no
    # data movement in HBM).
    G = 1
    if L < 128:
        for g in range(min(128 // L, rows), 0, -1):
            if rows % g == 0:
                G = g
                break
    rows_eff = rows // G
    L_eff = G * L
    if G > 1:
        x2 = x2.reshape(rows_eff, L_eff)

    # Lane tile: single block over L_eff when it fits the budget for the minimum
    # row tile, otherwise split L_eff over a reduction grid axis (multiple of 128).
    if sub * L_eff * itemsize <= _BLOCK_BUDGET_BYTES:
        TL = L_eff
    else:
        TL = max(128, (_BLOCK_BUDGET_BYTES // (sub * itemsize)) // 128 * 128)
    n_k = pl.cdiv(L_eff, TL)
    needs_mask = (L_eff % TL) != 0

    # Row tile: as large as the VMEM budget allows (amortizes the ~0.35us/step grid
    # overhead), dtype-aware sublane multiple, capped, and not (much) larger than the data.
    TM = _BLOCK_BUDGET_BYTES // (TL * itemsize)
    TM = min(TM, _TM_CAP, _round_up(rows_eff, sub))
    TM = max(sub, (TM // sub) * sub)
    n_i = pl.cdiv(rows_eff, TM)

    fill = _min_value(x2.dtype)
    kernel = _make_kernel(TM, TL, L_eff, G, L, needs_mask, fill)

    out = pl.pallas_call(
        kernel,
        out_shape=jax.ShapeDtypeStruct((rows_eff, G), x2.dtype),
        grid=(n_i, n_k),
        in_specs=[pl.BlockSpec((TM, TL), lambda i, k: (i, k))],
        out_specs=pl.BlockSpec((TM, G), lambda i, k: (i, 0)),
        compiler_params=pltpu.CompilerParams(
            dimension_semantics=("parallel", "arbitrary"),
            vmem_limit_bytes=_VMEM_LIMIT_BYTES,
        ),
    )(x2)

    return out.reshape(lead_shape)


if __name__ == "__main__":
    key = jax.random.PRNGKey(0)
    # Small NCHW-like input (as produced by an upstream CNN); pooling over dim=-1.
    x = jax.random.normal(key, (2, 4, 16, 16), dtype=jnp.float32)

    y = global_max_pooling(x, dim=-1)
    y = jax.block_until_ready(y)
    y_ref = jnp.max(x, axis=-1)
    assert y.shape == y_ref.shape, (y.shape, y_ref.shape)
    assert jnp.allclose(y, y_ref), "mismatch vs reference max (dim=-1, small L)"

    # L >= 128 path (no lane packing).
    x2 = jax.random.normal(jax.random.PRNGKey(1), (2, 3, 160), dtype=jnp.float32)
    y2 = jax.block_until_ready(global_max_pooling(x2, dim=-1))
    assert jnp.allclose(y2, jnp.max(x2, axis=-1)), "mismatch vs reference max (L>=128)"

    # Non-default reduction dim.
    x3 = jax.random.normal(jax.random.PRNGKey(2), (2, 8, 16), dtype=jnp.float32)
    y3 = jax.block_until_ready(global_max_pooling(x3, dim=1))
    assert jnp.allclose(y3, jnp.max(x3, axis=1)), "mismatch vs reference max (dim=1)"

    print("KERNEL_OK")
</pallas_src>

<mosaic_0001>
module attributes {stable_mosaic.version = 11 : i64} {
  func.func @kernel(%arg0: i32, %arg1: i32, %arg2: memref<16x128xf32, #tpu.memory_space<vmem>>, %arg3: memref<16x8xf32, #tpu.memory_space<vmem>>) attributes {dimension_semantics = [#tpu.dimension_semantics<parallel>, #tpu.dimension_semantics<arbitrary>], iteration_bounds = array<i64: 1, 1>, scalar_prefetch = 0 : i64, scratch_operands = 0 : i64, tpu.core_type = #tpu.core_type<tc>, window_params = [{transform_indices = @transform_0, window_bounds = array<i64: 16, 128>}, {transform_indices = @transform_1, window_bounds = array<i64: 16, 8>}]} {
    %c0 = arith.constant 0 : index
    %c0_0 = arith.constant 0 : index
    %0 = vector.load %arg2[%c0, %c0_0] : memref<16x128xf32, #tpu.memory_space<vmem>>, vector<16x128xf32>
    %1 = vector.shape_cast %0 : vector<16x128xf32> to vector<16x8x16xf32>
    %cst = arith.constant dense<0xFF800000> : vector<16x8xf32>
    %2 = vector.multi_reduction <maximumf>, %1, %cst [2] : vector<16x8x16xf32> to vector<16x8xf32>
    %c0_i32 = arith.constant 0 : i32
    %3 = arith.cmpi eq, %arg1, %c0_i32 : i32
    %4 = arith.extui %3 : i1 to i32
    %c0_i32_1 = arith.constant 0 : i32
    %5 = arith.cmpi ne, %4, %c0_i32_1 : i32
    scf.if %5 {
      %c0_4 = arith.constant 0 : index
      %c0_5 = arith.constant 0 : index
      %9 = vector.load %arg3[%c0_4, %c0_5] : memref<16x8xf32, #tpu.memory_space<vmem>>, vector<16x8xf32>
      tpu.vector_store %arg3[%c0_4, %c0_5], %2 {strides = array<i32>} : memref<16x8xf32, #tpu.memory_space<vmem>>, vector<16x8xf32>,
    } else {
    }
    %c0_i32_2 = arith.constant 0 : i32
    %6 = arith.cmpi sgt, %arg1, %c0_i32_2 : i32
    %7 = arith.extui %6 : i1 to i32
    %c0_i32_3 = arith.constant 0 : i32
    %8 = arith.cmpi ne, %7, %c0_i32_3 : i32
    scf.if %8 {
      %c0_4 = arith.constant 0 : index
      %c0_5 = arith.constant 0 : index
      %9 = vector.load %arg3[%c0_4, %c0_5] : memref<16x8xf32, #tpu.memory_space<vmem>>, vector<16x8xf32>
      %10 = arith.maximumf %9, %2 : vector<16x8xf32>
      %c0_6 = arith.constant 0 : index
      %c0_7 = arith.constant 0 : index
      %11 = vector.load %arg3[%c0_6, %c0_7] : memref<16x8xf32, #tpu.memory_space<vmem>>, vector<16x8xf32>
      tpu.vector_store %arg3[%c0_6, %c0_7], %10 {strides = array<i32>} : memref<16x8xf32, #tpu.memory_space<vmem>>, vector<16x8xf32>,
    } else {
    }
    return
  }
  func.func @transform_0(%arg0: i32, %arg1: i32) -> (i32, i32) {
    %c0_i32 = arith.constant 0 : i32
    return %arg0, %arg1 : i32, i32
  }
  func.func @transform_1(%arg0: i32, %arg1: i32) -> (i32, i32) {
    %c0_i32 = arith.constant 0 : i32
    %c0_i32_0 = arith.constant 0 : i32
    return %arg0, %c0_i32 : i32, i32
  }
}

</mosaic_0001>

<bundles_post_ra>
// kernel: tpu_custom_call.1
= control target key start
LH: loop header
LB: loop body
LE: loop exit
PB: predicated region body
PF: predicated region fallthrough
CT: control target
= control target key end

     0   :  { %6 = vsyncpa [#allocation3], 0  ;;  %s656_s6 = smov [#allocation2]   ;;  %s819_s0 = inlined_call_operand.hbm [shape: f32[16,128], index: 0, kind: input, shape index: {}]   ;;  %s820_s1 = inlined_call_operand.vmem [shape: f32[16,8], index: 1, kind: output, shape index: {}]  }
   0x1   :  { %s12_s7 = sshll.u32 %s656_s6, 4  ;;  %s13_s7 = int_to_ptr.vmem [resolvable:$true] %s12_s7 }
   0x2   :  { %s642_s8 = scalar_lea.vmem %s13_s7, 256  ;;  %p647_p1 = scmp.lt.s32.totalorder %s13_s7, %s13_s7 }
   0x3   :  { %p643_p0 = scmp.ne.s32.totalorder %s13_s7, %s642_s8  ;;  %p648_p2 = scmp.lt.s32.totalorder %s642_s8, %s642_s8 }
   0x5   :  { %p649_p3 = por %p648_p2, %p647_p1 }
   0x7   :  { %p650_p4 = pnand %p649_p3, %p643_p0 }
   0x9   :  { %653 = shalt.err (!%p650_p4)
}
   0xa   :  { %s657_s9 = smov 128   ;;  %s658_s10 = smov 8  }
   0xb   :  { %18 = dma.hbm_to_vmem [thread:$0]  %s819_s0, 256, %s13_s7, [#allocation3], %s657_s9, %s657_s9, %s658_s10  }
   0xc   :  { %654 = dma.done.wait [#allocation3], 256  }
   0xd   :  { %655 = vsyncadd [#allocation3], 4294967040  ;;  %v681_v0 = vld [vmem:[#allocation2] sm:$0xff]  ;;  %s659_s13 = smov 96   ;;  %s660_s14 = smov 112   ;;  %v685_v1 = vld [vmem:[#allocation2 + $0x8] sm:$0xff]  ;;  %v73_v2 = vlaneseq }
   0xe   :  { %32 = vrot.lane.b32.xlu1 %v681_v0, %s659_s13  ;;  %26 = vrot.lane.b32.xlu0 %v681_v0, %s660_s14  ;;  %s661_s15 = smov 80   ;;  %s662_s0 = smov 64   ;;  %v666_v14 = vmov 1983009808   ;;  %v667_v22 = vmov 1934713408  }
   0xf   :  { %s663_s16 = smov 48   ;;  %s664_s17 = smov 32   ;;  %v74_v3 = vshrl.u32 %v73_v2, 7  ;;  %v410_v4 = vand.u32 127, %v73_v2  ;;  %v71_v15 = vunpack.c.l.s4 %v666_v14  ;;  %v135_v23 = vunpack.c.l.s4 %v667_v22 }
  0x10   :  { %s665_s18 = smov 16   ;;  %vm340_vm0 = vcmask 130048   ;;  %vm475_vm1 = vcmask 1041409   ;;  %vm477_vm2 = vcmask 1042434   ;;  %vm479_vm3 = vcmask 1043459  }
  0x11   :  { %v699_v5 = vsub.s32 %v410_v4, %v74_v3  ;;  %v72_v18 = vunpack.c.0.s8 %v71_v15  ;;  %v136_v33 = vunpack.c.0.s8 %v135_v23  ;;  %vm481_vm4 = vcmask 1044484  }
  0x12   :  { %34 = vrot.lane.b32.xlu1 %v685_v1, %s659_s13  ;;  %28 = vrot.lane.b32.xlu0 %v685_v1, %s660_s14  ;;  %vm483_vm5 = vcmask 1045509   ;;  %vm485_vm6 = vcmask 1046534   ;;  %vm487_vm7 = vcmask 1047559   ;;  %vm498_vm8 = vcmask 64512  }
  0x13   :  { %v713_v24 = vsub.s32 %v72_v18, %v74_v3  ;;  %v731_v45 = vsub.s32 %v136_v33, %v74_v3 }
  0x16   :  { %40 = vrot.lane.b32.xlu1 %v685_v1, %s661_s15  ;;  %38 = vrot.lane.b32.xlu0 %v681_v0, %s661_s15 }
  0x1a   :  { %46 = vrot.lane.b32.xlu1 %v685_v1, %s662_s0  ;;  %44 = vrot.lane.b32.xlu0 %v681_v0, %s662_s0 }
  0x1e   :  { %52 = vrot.lane.b32.xlu1 %v685_v1, %s663_s16  ;;  %50 = vrot.lane.b32.xlu0 %v681_v0, %s663_s16 }
  0x22   :  { %58 = vrot.lane.b32.xlu1 %v685_v1, %s664_s17  ;;  %56 = vrot.lane.b32.xlu0 %v681_v0, %s664_s17 }
  0x26   :  { %64 = vrot.lane.b32.xlu1 %v685_v1, %s665_s18  ;;  %62 = vrot.lane.b32.xlu0 %v681_v0, %s665_s18 }
  0x80   :  { %v33_v6 = vpop.permute.xlu1 %32  ;;  %v27_v7 = vpop.permute.xlu0 %26 }
  0x81   :  { %v68_v25 = vcombine.low %v681_v0, %v33_v6  ;;  %v69_v53 = vcombine.high %v681_v0, %v33_v6 }
  0x83   :  { %v76_v36 = vrot.slane %v68_v25, %v713_v24  ;;  %v83_v2 = vrot.slane %v69_v53, %v713_v24 }
  0x84   :  { %v701_v8 = vpop.permute.xlu1 %34  ;;  %v703_v9 = vpop.permute.xlu0 %28 }
  0x85   :  { %v204_v26 = vcombine.low %v685_v1, %v701_v8 }
  0x87   :  { %v212_v37 = vrot.slane %v204_v26, %v713_v24 }
  0x88   :  { %v705_v10 = vpop.permute.xlu1 %40  ;;  %v39_v11 = vpop.permute.xlu0 %38 }
  0x89   :  { %v84_v19 = vcombine.low %v27_v7, %v39_v11  ;;  %v220_v27 = vcombine.low %v703_v9, %v705_v10  ;;  %v85_v46 = vcombine.high %v27_v7, %v39_v11  ;;  %v221_v18 = vcombine.high %v703_v9, %v705_v10 }
  0x8b   :  { %v92_v29 = vrot.slane %v84_v19, %v713_v24  ;;  %v228_v38 = vrot.slane %v220_v27, %v713_v24  ;;  %v99_v59 = vrot.slane %v85_v46, %v713_v24 }
  0x8c   :  { %v707_v12 = vpop.permute.xlu1 %46  ;;  %v45_v13 = vpop.permute.xlu0 %44 }
  0x8d   :  { %v132_v43 = vcombine.low %v76_v36, %v92_v29  ;;  %v268_v49 = vcombine.low %v212_v37, %v228_v38  ;;  %v133_v50 = vcombine.high %v76_v36, %v92_v29  ;;  %v148_v19 = vcombine.low %v83_v2, %v99_v59 }
  0x8f   :  { %v140_v55 = vrot.slane %v132_v43, %v731_v45  ;;  %v147_v63 = vrot.slane %v133_v50, %v731_v45  ;;  %v276_v0 = vrot.slane %v268_v49, %v731_v45  ;;  %v156_v9 = vrot.slane %v148_v19, %v731_v45 }
  0x90   :  { %v709_v16 = vpop.permute.xlu1 %52  ;;  %v51_v17 = vpop.permute.xlu0 %50 }
  0x94   :  { %v711_v20 = vpop.permute.xlu1 %58  ;;  %v57_v21 = vpop.permute.xlu0 %56 }
  0x95   :  { %v236_v28 = vcombine.low %v707_v12, %v711_v20  ;;  %v100_v30 = vcombine.low %v45_v13, %v57_v21  ;;  %v101_v47 = vcombine.high %v45_v13, %v57_v21  ;;  %v237_v15 = vcombine.high %v707_v12, %v711_v20 }
  0x97   :  { %v244_v39 = vrot.slane %v236_v28, %v713_v24  ;;  %v108_v44 = vrot.slane %v100_v30, %v713_v24  ;;  %v115_v60 = vrot.slane %v101_v47, %v713_v24  ;;  %v251_v27 = vrot.slane %v237_v15, %v713_v24 }
  0x98   :  { %v65_v31 = vpop.permute.xlu1 %64  ;;  %v63_v32 = vpop.permute.xlu0 %62 }
  0x99   :  { %v252_v34 = vcombine.low %v709_v16, %v65_v31  ;;  %v116_v35 = vcombine.low %v51_v17, %v63_v32  ;;  %v117_v41 = vcombine.high %v51_v17, %v63_v32  ;;  %v253_v3 = vcombine.high %v709_v16, %v65_v31 }
  0x9a   :  { %v205_v17 = vcombine.high %v685_v1, %v701_v8  ;;  %v269_v16 = vcombine.high %v212_v37, %v228_v38  ;;  %v235_v8 = vrot.slane %v221_v18, %v713_v24 }
  0x9b   :  { %v260_v40 = vrot.slane %v252_v34, %v713_v24  ;;  %v124_v42 = vrot.slane %v116_v35, %v713_v24  ;;  %v131_v54 = vrot.slane %v117_v41, %v713_v24  ;;  %v267_v21 = vrot.slane %v253_v3, %v713_v24 }
  0x9c   :  { %v219_v1 = vrot.slane %v205_v17, %v713_v24  ;;  %v283_v10 = vrot.slane %v269_v16, %v731_v45  ;;  %v149_v35 = vcombine.high %v83_v2, %v99_v59 }
  0x9d   :  { %v300_v48 = vcombine.low %v244_v39, %v260_v40  ;;  %v164_v51 = vcombine.low %v108_v44, %v124_v42  ;;  %v165_v52 = vcombine.high %v108_v44, %v124_v42  ;;  %v301_v4 = vcombine.high %v244_v39, %v260_v40 }
  0x9e   :  { %v180_v6 = vcombine.low %v115_v60, %v131_v54  ;;  %v316_v28 = vcombine.low %v251_v27, %v267_v21  ;;  %v181_v29 = vcombine.high %v115_v60, %v131_v54  ;;  %v284_v34 = vcombine.low %v219_v1, %v235_v8 }
  0x9f   :  { %v172_v56 = vrot.slane %v164_v51, %v731_v45  ;;  %v179_v57 = vrot.slane %v165_v52, %v731_v45  ;;  %v308_v58 = vrot.slane %v300_v48, %v731_v45  ;;  %v315_v23 = vrot.slane %v301_v4, %v731_v45 }
  0xa0   :  { %v188_v22 = vrot.slane %v180_v6, %v731_v45  ;;  %v195_v36 = vrot.slane %v181_v29, %v731_v45  ;;  %v324_v24 = vrot.slane %v316_v28, %v731_v45  ;;  %v163_v41 = vrot.slane %v149_v35, %v731_v45 }
  0xa1   :  { %v197_v61 = vcombine.high %v140_v55, %v172_v56  ;;  %v196_v62 = vcombine.low %v140_v55, %v172_v56  ;;  %v198_v13 = vcombine.low %v147_v63, %v179_v57  ;;  %v332_v14 = vcombine.low %v276_v0, %v308_v58 }
  0xa2   :  { %v199_v20 = vcombine.high %v147_v63, %v179_v57  ;;  %v333_v26 = vcombine.high %v276_v0, %v308_v58  ;;  %v200_v32 = vcombine.low %v156_v9, %v188_v22  ;;  %v334_v33 = vcombine.low %v283_v10, %v315_v23 }
  0xa3   :  { %v344_v7 = vsel %vm340_vm0, %v197_v61, -inf  ;;  %v341_v11 = vsel %vm340_vm0, %v196_v62, -inf  ;;  %v347_v25 = vsel %vm340_vm0, %v198_v13, -inf  ;;  %v365_v12 = vsel %vm340_vm0, %v332_v14, -inf }
  0xa4   :  { %345 = vmax.xlane.f32.xlu1 %v344_v7  ;;  %342 = vmax.xlane.f32.xlu0 %v341_v11  ;;  %v350_v30 = vsel %vm340_vm0, %v199_v20, -inf  ;;  %v368_v31 = vsel %vm340_vm0, %v333_v26, -inf  ;;  %v353_v37 = vsel %vm340_vm0, %v200_v32, -inf  ;;  %v371_v38 = vsel %vm340_vm0, %v334_v33, -inf }
  0xa5   :  { %v201_v39 = vcombine.high %v156_v9, %v188_v22  ;;  %v335_v40 = vcombine.high %v283_v10, %v315_v23  ;;  %v292_v42 = vrot.slane %v284_v34, %v731_v45  ;;  %v317_v43 = vcombine.high %v251_v27, %v267_v21 }
  0xa6   :  { %v202_v47 = vcombine.low %v163_v41, %v195_v36  ;;  %v285_v49 = vcombine.high %v219_v1, %v235_v8  ;;  %v203_v53 = vcombine.high %v163_v41, %v195_v36 }
  0xa7   :  { %v356_v44 = vsel %vm340_vm0, %v201_v39, -inf  ;;  %v374_v46 = vsel %vm340_vm0, %v335_v40, -inf  ;;  %v336_v48 = vcombine.low %v292_v42, %v324_v24  ;;  %v331_v50 = vrot.slane %v317_v43, %v731_v45 }
  0xa8   :  { %348 = vmax.xlane.f32.xlu1 %v347_v25  ;;  %366 = vmax.xlane.f32.xlu0 %v365_v12  ;;  %v359_v51 = vsel %vm340_vm0, %v202_v47, -inf  ;;  %v337_v54 = vcombine.high %v292_v42, %v324_v24  ;;  %v299_v55 = vrot.slane %v285_v49, %v731_v45  ;;  %v362_v56 = vsel %vm340_vm0, %v203_v53, -inf }
  0xa9   :  { %v377_v52 = vsel %vm340_vm0, %v336_v48, -inf }
  0xaa   :  { %v380_v57 = vsel %vm340_vm0, %v337_v54, -inf  ;;  %v338_v58 = vcombine.low %v299_v55, %v331_v50  ;;  %v339_v60 = vcombine.high %v299_v55, %v331_v50 }
  0xac   :  { %351 = vmax.xlane.f32.xlu1 %v350_v30  ;;  %369 = vmax.xlane.f32.xlu0 %v368_v31  ;;  %v383_v59 = vsel %vm340_vm0, %v338_v58, -inf  ;;  %v386_v61 = vsel %vm340_vm0, %v339_v60, -inf }
  0xb0   :  { %354 = vmax.xlane.f32.xlu1 %v353_v37  ;;  %372 = vmax.xlane.f32.xlu0 %v371_v38 }
  0xb4   :  { %357 = vmax.xlane.f32.xlu1 %v356_v44  ;;  %375 = vmax.xlane.f32.xlu0 %v374_v46 }
  0xb8   :  { %360 = vmax.xlane.f32.xlu1 %v359_v51  ;;  %378 = vmax.xlane.f32.xlu0 %v377_v52 }
  0xbc   :  { %363 = vmax.xlane.f32.xlu1 %v362_v56  ;;  %381 = vmax.xlane.f32.xlu0 %v380_v57 }
  0xc0   :  { %384 = vmax.xlane.f32.xlu0 %v383_v59 }
  0xc4   :  { %387 = vmax.xlane.f32.xlu0 %v386_v61 }
 0x12d   :  { %v346_v62 = vpop.xlane.xlu1 %345  ;;  %v343_v63 = vpop.xlane.xlu0 %342 }
 0x12e   :  { %v418_v13 = vrot.slane %v346_v62, %v699_v5  ;;  %v414_v14 = vrot.slane %v343_v63, %v699_v5 }
 0x130   :  { %v476_v21 = vsel %vm475_vm1, %v418_v13, %v414_v14 }
 0x131   :  { %v349_v0 = vpop.xlane.xlu1 %348  ;;  %v367_v2 = vpop.xlane.xlu0 %366 }
 0x132   :  { %v422_v15 = vrot.slane %v349_v0, %v699_v5  ;;  %v446_v29 = vrot.slane %v367_v2, %v699_v5 }
 0x134   :  { %v478_v23 = vsel %vm477_vm2, %v422_v15, %v476_v21 }
 0x135   :  { %v352_v3 = vpop.xlane.xlu1 %351  ;;  %v370_v45 = vpop.xlane.xlu0 %369 }
 0x136   :  { %v426_v17 = vrot.slane %v352_v3, %v699_v5  ;;  %v450_v1 = vrot.slane %v370_v45, %v699_v5 }
 0x138   :  { %v480_v12 = vsel %vm479_vm3, %v426_v17, %v478_v23  ;;  %v489_v34 = vsel %vm475_vm1, %v450_v1, %v446_v29 }
 0x139   :  { %v355_v4 = vpop.xlane.xlu1 %354  ;;  %v373_v6 = vpop.xlane.xlu0 %372 }
 0x13a   :  { %v430_v18 = vrot.slane %v355_v4, %v699_v5  ;;  %v454_v10 = vrot.slane %v373_v6, %v699_v5 }
 0x13c   :  { %v482_v20 = vsel %vm481_vm4, %v430_v18, %v480_v12  ;;  %v490_v36 = vsel %vm477_vm2, %v454_v10, %v489_v34 }
 0x13d   :  { %v358_v7 = vpop.xlane.xlu1 %357  ;;  %v376_v11 = vpop.xlane.xlu0 %375 }
 0x13e   :  { %v434_v22 = vrot.slane %v358_v7, %v699_v5  ;;  %v458_v30 = vrot.slane %v376_v11, %v699_v5 }
 0x140   :  { %v484_v8 = vsel %vm483_vm5, %v434_v22, %v482_v20  ;;  %v491_v37 = vsel %vm479_vm3, %v458_v30, %v490_v36 }
 0x141   :  { %v361_v16 = vpop.xlane.xlu1 %360  ;;  %v379_v19 = vpop.xlane.xlu0 %378 }
 0x142   :  { %v438_v25 = vrot.slane %v361_v16, %v699_v5  ;;  %v462_v32 = vrot.slane %v379_v19, %v699_v5 }
 0x144   :  { %v486_v28 = vsel %vm485_vm6, %v438_v25, %v484_v8  ;;  %v492_v38 = vsel %vm481_vm4, %v462_v32, %v491_v37 }
 0x145   :  { %v364_v26 = vpop.xlane.xlu1 %363  ;;  %v382_v27 = vpop.xlane.xlu0 %381 }
 0x146   :  { %v442_v9 = vrot.slane %v364_v26, %v699_v5  ;;  %v466_v35 = vrot.slane %v382_v27, %v699_v5 }
 0x148   :  { %v488_v31 = vsel %vm487_vm7, %v442_v9, %v486_v28  ;;  %v493_v40 = vsel %vm483_vm5, %v466_v35, %v492_v38 }
 0x149   :  { %499 = vst.msk [vmem:[%s820_s1] sm:$0xff] %vm498_vm8, %v488_v31  ;;  %v385_v33 = vpop.xlane.xlu0 %384 }
 0x14a   :  { %v470_v24 = vrot.slane %v385_v33, %v699_v5 }
 0x14c   :  { %v494_v42 = vsel %vm485_vm6, %v470_v24, %v493_v40 }
 0x14d   :  { %v388_v39 = vpop.xlane.xlu0 %387 }
 0x14e   :  { %v474_v41 = vrot.slane %v388_v39, %v699_v5 }
 0x150   :  { %v495_v43 = vsel %vm487_vm7, %v474_v41, %v494_v42 }
 0x151   :  { %500 = vst.msk [vmem:[%s820_s1 + $0x8] sm:$0xff] %vm498_vm8, %v495_v43 }
 0x152   :  { %621 = vsyncpa [#allocation3], 1 }

</bundles_post_ra>
